<compile_context>
chip_gen: v6e
topology: v6e:2x2x1
jax: 0.10.0
libtpu: 0.0.40
codegen_flags: <defaults>
</compile_context>

<pallas_src>
import functools

import jax
import jax.numpy as jnp
from jax.experimental import pallas as pl
from jax.experimental.pallas import tpu as pltpu

INPUT_DIM = 50
HIDDEN = 64
OUT_DIM = 4


def _round_up(n, m):
    return ((n + m - 1) // m) * m


def mlp_kernel(x_ref, w1_ref, b1_ref, w2_ref, b2_ref, o_ref):
    # (TB, 50) @ (50, 64) -> f32 (TB, 64). MXU runs bf16-native when inputs are bf16.
    h = jnp.dot(x_ref[...], w1_ref[...], preferred_element_type=jnp.float32)
    h = jnp.maximum(h + b1_ref[...], 0.0)          # bias + ReLU on the VPU (slack slot)
    # Dropout(0.2): identity at inference time — intentionally omitted.
    # (TB, 64) @ (64, 4) -> f32 (TB, 4); cast h to the weight dtype so a bf16
    # second layer also runs in the MXU's native bf16 mode.
    y = jnp.dot(h.astype(w2_ref.dtype), w2_ref[...], preferred_element_type=jnp.float32)
    o_ref[...] = (y + b2_ref[...]).astype(o_ref.dtype)


@functools.partial(jax.jit, static_argnames=("block_b",))
def mlp_quartile_classifier(x, w1, b1, w2, b2, *, block_b=512):
    """x: (B, 50) f32 or bf16. Weights pre-transposed to (in, out). Returns (B, 4) f32."""
    B = x.shape[0]
    # Tile must be a multiple of 8 sublanes; cap near B so tiny batches don't
    # allocate an oversized (mostly padded) block.
    tb = min(_round_up(block_b, 8), _round_up(B, 8))
    grid = (pl.cdiv(B, tb),)
    return pl.pallas_call(
        mlp_kernel,
        out_shape=jax.ShapeDtypeStruct((B, OUT_DIM), jnp.float32),
        grid_spec=pltpu.PrefetchScalarGridSpec(
            num_scalar_prefetch=0,
            grid=grid,
            in_specs=[
                # x streams in batch tiles (double-buffered by the Pallas pipeline).
                pl.BlockSpec((tb, INPUT_DIM), lambda i: (i, 0)),
                # Weights / biases: constant index maps -> stay resident in VMEM.
                pl.BlockSpec((INPUT_DIM, HIDDEN), lambda i: (0, 0)),
                pl.BlockSpec((1, HIDDEN), lambda i: (0, 0)),
                pl.BlockSpec((HIDDEN, OUT_DIM), lambda i: (0, 0)),
                pl.BlockSpec((1, OUT_DIM), lambda i: (0, 0)),
            ],
            out_specs=pl.BlockSpec((tb, OUT_DIM), lambda i: (i, 0)),
        ),
        compiler_params=pltpu.CompilerParams(
            # Independent batch tiles -> megacore sharding on v7x; no-op on v5e/v6e.
            dimension_semantics=("parallel",),
        ),
    )(x, w1, b1, w2, b2)


def init_params(key):
    """Deterministic init mimicking PyTorch nn.Linear default (Kaiming-uniform-ish)."""
    k1, k2, k3, k4 = jax.random.split(key, 4)
    bound1 = 1.0 / jnp.sqrt(INPUT_DIM)
    bound2 = 1.0 / jnp.sqrt(HIDDEN)
    # Stored as (in, out) so kernel computes x @ W directly (== PyTorch x @ W^T).
    w1 = jax.random.uniform(k1, (INPUT_DIM, HIDDEN), jnp.float32, -bound1, bound1)
    b1 = jax.random.uniform(k2, (1, HIDDEN), jnp.float32, -bound1, bound1)
    w2 = jax.random.uniform(k3, (HIDDEN, OUT_DIM), jnp.float32, -bound2, bound2)
    b2 = jax.random.uniform(k4, (1, OUT_DIM), jnp.float32, -bound2, bound2)
    return w1, b1, w2, b2


if __name__ == "__main__":
    key = jax.random.PRNGKey(0)
    kx, kp = jax.random.split(key)

    # Small demo shapes; B deliberately not a multiple of the tile so the padded
    # tail tile (Pallas partial-block masking) is exercised.
    B = 300
    TB = 128
    x = jax.random.normal(kx, (B, INPUT_DIM), dtype=jnp.float32)
    w1, b1, w2, b2 = init_params(kp)

    # --- f32 path: matches the plain-JAX (PyTorch eval) reference tightly ---
    logits = mlp_quartile_classifier(x, w1, b1, w2, b2, block_b=TB)
    jax.block_until_ready(logits)
    ref = jnp.maximum(x @ w1 + b1, 0.0) @ w2 + b2
    assert logits.shape == (B, OUT_DIM)
    assert jnp.allclose(logits, ref, atol=1e-5, rtol=1e-5)

    # --- bf16 path (halves HBM read traffic; f32 accumulation) ---
    x16 = x.astype(jnp.bfloat16)
    w1_16 = w1.astype(jnp.bfloat16)
    w2_16 = w2.astype(jnp.bfloat16)
    logits16 = mlp_quartile_classifier(x16, w1_16, b1, w2_16, b2, block_b=TB)
    jax.block_until_ready(logits16)
    h_ref = jnp.maximum(x16.astype(jnp.float32) @ w1_16.astype(jnp.float32) + b1, 0.0)
    ref16 = h_ref.astype(jnp.bfloat16).astype(jnp.float32) @ w2_16.astype(jnp.float32) + b2
    assert logits16.shape == (B, OUT_DIM)
    assert jnp.allclose(logits16, ref16, atol=5e-2, rtol=5e-2)

    print("KERNEL_OK")
</pallas_src>

<mosaic_0001>
module attributes {stable_mosaic.version = 11 : i64} {
  func.func @mlp_kernel(%arg0: i32, %arg1: memref<128x50xf32, #tpu.memory_space<vmem>>, %arg2: memref<50x64xf32, #tpu.memory_space<vmem>>, %arg3: memref<1x64xf32, #tpu.memory_space<vmem>>, %arg4: memref<64x4xf32, #tpu.memory_space<vmem>>, %arg5: memref<1x4xf32, #tpu.memory_space<vmem>>, %arg6: memref<128x4xf32, #tpu.memory_space<vmem>>) attributes {dimension_semantics = [#tpu.dimension_semantics<parallel>], iteration_bounds = array<i64: 3>, scalar_prefetch = 0 : i64, scratch_operands = 0 : i64, tpu.core_type = #tpu.core_type<tc>, window_params = [{transform_indices = @transform_0, window_bounds = array<i64: 128, 50>}, {pipeline_mode = #tpu.pipeline_mode<synchronous>, transform_indices = @transform_1, window_bounds = array<i64: 50, 64>}, {pipeline_mode = #tpu.pipeline_mode<synchronous>, transform_indices = @transform_2, window_bounds = array<i64: 1, 64>}, {pipeline_mode = #tpu.pipeline_mode<synchronous>, transform_indices = @transform_3, window_bounds = array<i64: 64, 4>}, {pipeline_mode = #tpu.pipeline_mode<synchronous>, transform_indices = @transform_4, window_bounds = array<i64: 1, 4>}, {transform_indices = @transform_5, window_bounds = array<i64: 128, 4>}]} {
    %c0 = arith.constant 0 : index
    %c0_0 = arith.constant 0 : index
    %0 = vector.load %arg1[%c0, %c0_0] : memref<128x50xf32, #tpu.memory_space<vmem>>, vector<128x50xf32>
    %c0_1 = arith.constant 0 : index
    %c0_2 = arith.constant 0 : index
    %1 = vector.load %arg2[%c0_1, %c0_2] : memref<50x64xf32, #tpu.memory_space<vmem>>, vector<50x64xf32>
    %cst = arith.constant dense<0.000000e+00> : vector<128x64xf32>
    %2 = tpu.matmul %0, %1, %cst {dimension_numbers = #tpu.dot_dimension_numbers<[1], [0], [0], [1], [0, 0, 1, 1], [], []>} : vector<128x50xf32>, vector<50x64xf32>, vector<128x64xf32> -> vector<128x64xf32>
    %c0_3 = arith.constant 0 : index
    %c0_4 = arith.constant 0 : index
    %3 = vector.load %arg3[%c0_3, %c0_4] : memref<1x64xf32, #tpu.memory_space<vmem>>, vector<1x64xf32>
    %4 = vector.broadcast %3 : vector<1x64xf32> to vector<128x64xf32>
    %5 = arith.addf %2, %4 : vector<128x64xf32>
    %cst_5 = arith.constant 0.000000e+00 : f32
    %6 = vector.broadcast %cst_5 : f32 to vector<128x64xf32>
    %7 = arith.maximumf %5, %6 : vector<128x64xf32>
    %c0_6 = arith.constant 0 : index
    %c0_7 = arith.constant 0 : index
    %8 = vector.load %arg4[%c0_6, %c0_7] : memref<64x4xf32, #tpu.memory_space<vmem>>, vector<64x4xf32>
    %cst_8 = arith.constant dense<0.000000e+00> : vector<128x4xf32>
    %9 = tpu.matmul %7, %8, %cst_8 {dimension_numbers = #tpu.dot_dimension_numbers<[1], [0], [0], [1], [0, 0, 1, 1], [], []>} : vector<128x64xf32>, vector<64x4xf32>, vector<128x4xf32> -> vector<128x4xf32>
    %c0_9 = arith.constant 0 : index
    %c0_10 = arith.constant 0 : index
    %10 = vector.load %arg5[%c0_9, %c0_10] : memref<1x4xf32, #tpu.memory_space<vmem>>, vector<1x4xf32>
    %11 = vector.broadcast %10 : vector<1x4xf32> to vector<128x4xf32>
    %12 = arith.addf %9, %11 : vector<128x4xf32>
    %c0_11 = arith.constant 0 : index
    %c0_12 = arith.constant 0 : index
    %13 = vector.load %arg6[%c0_11, %c0_12] : memref<128x4xf32, #tpu.memory_space<vmem>>, vector<128x4xf32>
    tpu.vector_store %arg6[%c0_11, %c0_12], %12 {strides = array<i32>} : memref<128x4xf32, #tpu.memory_space<vmem>>, vector<128x4xf32>,
    return
  }
  func.func @transform_0(%arg0: i32) -> (i32, i32) {
    %c0_i32 = arith.constant 0 : i32
    %c0_i32_0 = arith.constant 0 : i32
    return %arg0, %c0_i32 : i32, i32
  }
  func.func @transform_1(%arg0: i32) -> (i32, i32) {
    %c0_i32 = arith.constant 0 : i32
    %c0_i32_0 = arith.constant 0 : i32
    %c0_i32_1 = arith.constant 0 : i32
    return %c0_i32, %c0_i32_0 : i32, i32
  }
  func.func @transform_2(%arg0: i32) -> (i32, i32) {
    %c0_i32 = arith.constant 0 : i32
    %c0_i32_0 = arith.constant 0 : i32
    %c0_i32_1 = arith.constant 0 : i32
    return %c0_i32, %c0_i32_0 : i32, i32
  }
  func.func @transform_3(%arg0: i32) -> (i32, i32) {
    %c0_i32 = arith.constant 0 : i32
    %c0_i32_0 = arith.constant 0 : i32
    %c0_i32_1 = arith.constant 0 : i32
    return %c0_i32, %c0_i32_0 : i32, i32
  }
  func.func @transform_4(%arg0: i32) -> (i32, i32) {
    %c0_i32 = arith.constant 0 : i32
    %c0_i32_0 = arith.constant 0 : i32
    %c0_i32_1 = arith.constant 0 : i32
    return %c0_i32, %c0_i32_0 : i32, i32
  }
  func.func @transform_5(%arg0: i32) -> (i32, i32) {
    %c0_i32 = arith.constant 0 : i32
    %c0_i32_0 = arith.constant 0 : i32
    return %arg0, %c0_i32 : i32, i32
  }
}

</mosaic_0001>

<bundles_post_ra>
// kernel: mlp_quartile_classifier.1
= control target key start
LH: loop header
LB: loop body
LE: loop exit
PB: predicated region body
PF: predicated region fallthrough
CT: control target
= control target key end

     0   :  { %s1385_s18 = smov 0   ;;  %s1387_s19 = smov 0   ;;  %s1658_s0 = inlined_call_operand.vmem [shape: f32[300,50], index: 0, kind: input, shape index: {}]   ;;  %s1659_s1 = inlined_call_operand.vmem [shape: f32[50,64], index: 1, kind: input, shape index: {}]   ;;  %s1660_s2 = inlined_call_operand.vmem [shape: f32[1,64], index: 2, kind: input, shape index: {}]   ;;  %s1661_s3 = inlined_call_operand.vmem [shape: f32[64,4], index: 3, kind: input, shape index: {}]   ;;  %s1662_s4 = inlined_call_operand.vmem [shape: f32[1,4], index: 4, kind: input, shape index: {}]   ;;  %s1663_s5 = inlined_call_operand.vmem [shape: f32[300,4], index: 5, kind: output, shape index: {}]  }
   0x1   :  { %s1389_s20 = smov 0  }
   0x2 LB: > { %s1398_s21 = sadd.s32 4294967295, %s1321_s20   ;;  %s1400_s22 = sadd.s32 1, %s1321_s20   ;;  %s1321_s20 = sphi %s1389_s20, %s1670_s20   ;;  %s1317_s19 = sphi %s1387_s19, %s1669_s19   ;;  %s1313_s18 = sphi %s1385_s18, %s1668_s18  }
   0x3   : > { %s129_s23 = ssub.s32 %s1321_s20, %s1400_s22  ;;  %s132_s24 = sadd.s32 1, %s1317_s19 }
   0x4   : > { %p130_p0 = scmp.eq.s32.totalorder %s129_s23, 0  ;;  %p142_p1 = scmp.ne.s32.totalorder %s1317_s19, %s1313_s18 }
   0x5   : > { %p143_p2 = scmp.eq.s32.totalorder %s1398_s21, 2  ;;  %p995_p3 = scmp.ge.s32.totalorder %s1321_s20, 1 }
   0x6   : > { %s1408_s25 = scalar_select %p130_p0, %s1317_s19, %s132_s24  }
   0x7   : > { %p1410_p4 = por %p143_p2, %p142_p1  ;;  %p196_p5 = scmp.lt.s32.totalorder %s1321_s20, 4 }
   0x9   : > { %p197_p6 = pnand %p995_p3, %p196_p5 }
   0xa   : > { %s1421_s6 = sshll.u32 (!%p197_p6), %s1398_s21, 4  ;;  %s224_s28 = sand.u32 (!%p197_p6), 1, %s1313_s18  }
   0xb   : > { %200 = sbr.rel (%p197_p6) target bundleno = 498 (0x1f2), region = 40  ;;  %p232_p7 = scmp.lt.s32.totalorder (!%p197_p6), %s1421_s6, 37 }
  0x10   : > { %v268_v0 = vld [vmem:[%s1659_s1 + $0x30] sm:$0x3]  ;;  %vm325_vm0 = vcmask 1041408   ;;  %v267_v1 = vld [vmem:[%s1659_s1 + $0x28] sm:$0xff]  ;;  %v266_v2 = vld [vmem:[%s1659_s1 + $0x20] sm:$0xff]  ;;  %s233_s13 = scalar_select %p232_p7, %s1421_s6, 37 }
  0x11   : > { %1101 = vmatprep.subr.msk.mxu0 %vm325_vm0, %v268_v0  ;;  %v497_v3 = vld [vmem:[%s1661_s3 + $0x38] sm:$0xff]  ;;  %v496_v4 = vld [vmem:[%s1661_s3 + $0x30] sm:$0xff]  ;;  %v495_v6 = vld [vmem:[%s1661_s3 + $0x28] sm:$0xff]  ;;  %vm276_vm1 = vcmask 408576   ;;  %vm505_vm2 = vcmask 523264   ;;  %vm699_vm3 = vcmask 31744  }
  0x12   : > { %1102 = vmatpush3.msk.msra.mxu0 %vm325_vm0, %v268_v0  ;;  %1139 = vmatprep.subr.mxu1 %v497_v3  ;;  %v265_v5 = vld [vmem:[%s1659_s1 + $0x18] sm:$0xff]  ;;  %s998_s20 = sshll.u32 %s233_s13, 3  ;;  %v264_v7 = vld [vmem:[%s1659_s1 + $0x10] sm:$0xff]  ;;  %v494_v9 = vld [vmem:[%s1661_s3 + $0x20] sm:$0xff]  ;;  %s724_s18 = ssub.s32 (%p1410_p4), 38, %s1421_s6 }
  0x13   : > { %1103 = vmatprep.subr.mxu0 %v267_v1  ;;  %1140 = vmatpush3.msra.mxu1 %v497_v3  ;;  %s1446_s29 = scalar_lea.vmem %s1658_s0, %s998_s20  ;;  %v263_v10 = vld [vmem:[%s1659_s1 + $0x8] sm:$0xff]  ;;  %v262_v11 = vld [vmem:[%s1659_s1] sm:$0xff]  ;;  %v493_v27 = vld [vmem:[%s1661_s3 + $0x18] sm:$0xff]  ;;  %s1051_s9 = sshll.u32 (%p1410_p4), %s1398_s21, 7 }
  0x14   : > { %1104 = vmatpush3.msra.mxu0 %v267_v1  ;;  %1141 = vmatprep.subr.mxu1 %v496_v4  ;;  %v246_v8 = vld [vmem:[%s1446_s29] sm:$0xff]  ;;  %v247_v12 = vld [vmem:[%s1446_s29 + $0x8] sm:$0xff]  ;;  %v248_v13 = vld [vmem:[%s1446_s29 + $0x10] sm:$0xff]  ;;  %p725_p8 = scmp.lt.s32.totalorder (%p1410_p4), %s724_s18, 16  ;;  %s1565_s12 = scalar_lea.vmem (%p1410_p4), %s1663_s5, %s1051_s9  }
  0x15   : > { %1105 = vmatprep.subr.mxu0 %v266_v2  ;;  %1142 = vmatpush3.msra.mxu1 %v496_v4  ;;  %v249_v14 = vld [vmem:[%s1446_s29 + $0x18] sm:$0xff]  ;;  %v250_v15 = vld [vmem:[%s1446_s29 + $0x20] sm:$0xff]  ;;  %v251_v16 = vld [vmem:[%s1446_s29 + $0x28] sm:$0xff] }
  0x16   : > { %1106 = vmatpush3.msra.mxu0 %v266_v2  ;;  %1143 = vmatprep.subr.mxu1 %v495_v6  ;;  %v252_v17 = vld [vmem:[%s1446_s29 + $0x30] sm:$0xff]  ;;  %v253_v18 = vld [vmem:[%s1446_s29 + $0x38] sm:$0xff]  ;;  %v254_v19 = vld [vmem:[%s1446_s29 + $0x40] sm:$0xff] }
  0x17   : > { %1107 = vmatprep.subr.mxu0 %v265_v5  ;;  %1115 = vmatprep.mubr.msk.f32.mxu0 %vm276_vm1, %v246_v8  ;;  %v255_v20 = vld [vmem:[%s1446_s29 + $0x48] sm:$0xff]  ;;  %v256_v21 = vld [vmem:[%s1446_s29 + $0x50] sm:$0xff]  ;;  %v257_v22 = vld [vmem:[%s1446_s29 + $0x58] sm:$0xff] }
  0x18   : > { %1108 = vmatpush3.msra.mxu0 %v265_v5  ;;  %1144 = vmatpush3.msra.mxu1 %v495_v6  ;;  %v258_v23 = vld [vmem:[%s1446_s29 + $0x60] sm:$0xff]  ;;  %v259_v24 = vld [vmem:[%s1446_s29 + $0x68] sm:$0xff]  ;;  %v260_v25 = vld [vmem:[%s1446_s29 + $0x70] sm:$0xff] }
  0x19   : > { %1109 = vmatprep.subr.mxu0 %v264_v7  ;;  %1145 = vmatprep.subr.mxu1 %v494_v9  ;;  %v261_v26 = vld [vmem:[%s1446_s29 + $0x78] sm:$0xff]  ;;  %v492_v28 = vld [vmem:[%s1661_s3 + $0x10] sm:$0xff]  ;;  %v491_v29 = vld [vmem:[%s1661_s3 + $0x8] sm:$0xff]  ;;  %s996_s29 = sshll.u32 %s224_s28, 7 }
  0x1a   : > { %1110 = vmatpush3.msra.mxu0 %v264_v7  ;;  %1146 = vmatpush3.msra.mxu1 %v494_v9  ;;  %v490_v30 = vld [vmem:[%s1661_s3] sm:$0xff]  ;;  %s1524_s8 = scalar_lea.vmem [#allocation2], %s996_s29  }
  0x1b   : > { %1111 = vmatprep.subr.mxu0 %v263_v10  ;;  %1147 = vmatprep.subr.mxu1 %v493_v27  ;;  %v999_v31 = vld [vmem:[%s1660_s2] ss:$0 sm:$0xff] }
  0x1c   : > { %1112 = vmatpush3.msra.mxu0 %v263_v10  ;;  %1148 = vmatpush3.msra.mxu1 %v493_v27 }
  0x1d   : > { %1113 = vmatprep.subr.mxu0 %v262_v11  ;;  %1149 = vmatprep.subr.mxu1 %v492_v28 }
  0x1e   : > { %1114 = vmatpush3.msra.mxu0 %v262_v11  ;;  %1150 = vmatpush3.msra.mxu1 %v492_v28 }
  0x1f   : > { %1116 = vmatmul.mubr.msk.f32.vlgmr.msra.gmra.mxu0 %vm276_vm1, %v247_v12  ;;  %1151 = vmatprep.subr.mxu1 %v491_v29 }
  0x20   : > { %1118 = vmatprep.mubr.msk.f32.mxu0 %vm276_vm1, %v248_v13  ;;  %1152 = vmatpush3.msra.mxu1 %v491_v29 }
  0x21   : > { %1153 = vmatprep.subr.mxu1 %v490_v30 }
  0x22   : > { %1154 = vmatpush3.msra.mxu1 %v490_v30 }
  0x23   : > { %1119 = vmatmul.mubr.msk.f32.gmra.mxu0 %vm276_vm1, %v249_v14 }
  0x24   : > { %1121 = vmatprep.mubr.msk.f32.mxu0 %vm276_vm1, %v250_v15 }
  0x27   : > { %1122 = vmatmul.mubr.msk.f32.gmra.mxu0 %vm276_vm1, %v251_v16  ;;  %v1017_v16 = vld [vmem:[%s1662_s4] ss:$0 sm:$0xff] }
  0x28   : > { %1124 = vmatprep.mubr.msk.f32.mxu0 %vm276_vm1, %v252_v17 }
  0x2b   : > { %1125 = vmatmul.mubr.msk.f32.gmra.mxu0 %vm276_vm1, %v253_v18 }
  0x2c   : > { %1127 = vmatprep.mubr.msk.f32.mxu0 %vm276_vm1, %v254_v19 }
  0x2f   : > { %1128 = vmatmul.mubr.msk.f32.gmra.mxu0 %vm276_vm1, %v255_v20 }
  0x30   : > { %1130 = vmatprep.mubr.msk.f32.mxu0 %vm276_vm1, %v256_v21 }
  0x33   : > { %1131 = vmatmul.mubr.msk.f32.gmra.mxu0 %vm276_vm1, %v257_v22 }
  0x34   : > { %1133 = vmatprep.mubr.msk.f32.mxu0 %vm276_vm1, %v258_v23 }
  0x37   : > { %1134 = vmatmul.mubr.msk.f32.gmra.mxu0 %vm276_vm1, %v259_v24 }
  0x38   : > { %1136 = vmatprep.mubr.msk.f32.mxu0 %vm276_vm1, %v260_v25 }
  0x3b   : > { %1137 = vmatmul.mubr.msk.f32.gmra.mxu0 %vm276_vm1, %v261_v26 }
  0xdf   : > { %v1117_v32 = vpop.f32.mrf.mxu0 }
  0xe0   : > { %v401_v33 = vadd.f32 %v1117_v32, %v999_v31 }
  0xe1   : > { %v395_v34 = vpop.f32.mrf.mxu0 }
  0xe2   : > { %v396_v35 = vadd.f32 %v999_v31, %v395_v34  ;;  %v475_v38 = vmax.f32 %v401_v33, 0.0 }
  0xe3   : > { %v1120_v36 = vpop.f32.mrf.mxu0 }
  0xe4   : > { %v474_v37 = vmax.f32 %v396_v35, 0.0  ;;  %v411_v39 = vadd.f32 %v1120_v36, %v999_v31 }
  0xe5   : > { %v405_v40 = vpop.f32.mrf.mxu0 }
  0xe6   : > { %v406_v41 = vadd.f32 %v999_v31, %v405_v40  ;;  %1155 = vmatprep.mubr.msk.f32.mxu1 %vm505_vm2, %v474_v37  ;;  %v477_v44 = vmax.f32 %v411_v39, 0.0 }
  0xe7   : > { %v1123_v42 = vpop.f32.mrf.mxu0  ;;  %1156 = vmatmul.mubr.msk.f32.vlgmr.msra.gmra.mxu1 %vm505_vm2, %v475_v38 }
  0xe8   : > { %v476_v43 = vmax.f32 %v406_v41, 0.0  ;;  %v421_v45 = vadd.f32 %v1123_v42, %v999_v31 }
  0xe9   : > { %v415_v46 = vpop.f32.mrf.mxu0 }
  0xea   : > { %v416_v47 = vadd.f32 %v999_v31, %v415_v46  ;;  %1158 = vmatprep.mubr.msk.f32.mxu1 %vm505_vm2, %v476_v43  ;;  %v479_v50 = vmax.f32 %v421_v45, 0.0 }
  0xeb   : > { %v1126_v48 = vpop.f32.mrf.mxu0  ;;  %1159 = vmatmul.mubr.msk.f32.gmra.mxu1 %vm505_vm2, %v477_v44 }
  0xec   : > { %v478_v49 = vmax.f32 %v416_v47, 0.0  ;;  %v431_v51 = vadd.f32 %v1126_v48, %v999_v31 }
  0xed   : > { %v425_v52 = vpop.f32.mrf.mxu0 }
  0xee   : > { %v426_v53 = vadd.f32 %v999_v31, %v425_v52  ;;  %1161 = vmatprep.mubr.msk.f32.mxu1 %vm505_vm2, %v478_v49  ;;  %v481_v56 = vmax.f32 %v431_v51, 0.0 }
  0xef   : > { %v1129_v54 = vpop.f32.mrf.mxu0  ;;  %1162 = vmatmul.mubr.msk.f32.gmra.mxu1 %vm505_vm2, %v479_v50 }
  0xf0   : > { %v480_v55 = vmax.f32 %v426_v53, 0.0  ;;  %v441_v57 = vadd.f32 %v1129_v54, %v999_v31 }
  0xf1   : > { %v435_v58 = vpop.f32.mrf.mxu0 }
  0xf2   : > { %v436_v59 = vadd.f32 %v999_v31, %v435_v58  ;;  %1164 = vmatprep.mubr.msk.f32.mxu1 %vm505_vm2, %v480_v55  ;;  %v483_v62 = vmax.f32 %v441_v57, 0.0 }
  0xf3   : > { %v1132_v60 = vpop.f32.mrf.mxu0  ;;  %1165 = vmatmul.mubr.msk.f32.gmra.mxu1 %vm505_vm2, %v481_v56 }
  0xf4   : > { %v482_v61 = vmax.f32 %v436_v59, 0.0  ;;  %v451_v63 = vadd.f32 %v1132_v60, %v999_v31 }
  0xf5   : > { %v445_v0 = vpop.f32.mrf.mxu0 }
  0xf6   : > { %v446_v1 = vadd.f32 %v999_v31, %v445_v0  ;;  %1167 = vmatprep.mubr.msk.f32.mxu1 %vm505_vm2, %v482_v61  ;;  %v485_v4 = vmax.f32 %v451_v63, 0.0 }
  0xf7   : > { %v1135_v2 = vpop.f32.mrf.mxu0  ;;  %1168 = vmatmul.mubr.msk.f32.gmra.mxu1 %vm505_vm2, %v483_v62 }
  0xf8   : > { %v484_v3 = vmax.f32 %v446_v1, 0.0  ;;  %v461_v5 = vadd.f32 %v1135_v2, %v999_v31 }
  0xf9   : > { %v455_v6 = vpop.f32.mrf.mxu0 }
  0xfa   : > { %v456_v7 = vadd.f32 %v999_v31, %v455_v6  ;;  %1170 = vmatprep.mubr.msk.f32.mxu1 %vm505_vm2, %v484_v3  ;;  %v487_v10 = vmax.f32 %v461_v5, 0.0 }
  0xfb   : > { %v1138_v8 = vpop.f32.mrf.mxu0  ;;  %1171 = vmatmul.mubr.msk.f32.gmra.mxu1 %vm505_vm2, %v485_v4 }
  0xfc   : > { %v486_v9 = vmax.f32 %v456_v7, 0.0  ;;  %v471_v11 = vadd.f32 %v1138_v8, %v999_v31 }
  0xfd   : > { %v465_v12 = vpop.f32.mrf.mxu0 }
  0xfe   : > { %v466_v13 = vadd.f32 %v999_v31, %v465_v12  ;;  %1173 = vmatprep.mubr.msk.f32.mxu1 %vm505_vm2, %v486_v9  ;;  %v489_v15 = vmax.f32 %v471_v11, 0.0 }
  0xff   : > { %1174 = vmatmul.mubr.msk.f32.gmra.mxu1 %vm505_vm2, %v487_v10 }
 0x100   : > { %v488_v14 = vmax.f32 %v466_v13, 0.0 }
 0x102   : > { %1176 = vmatprep.mubr.msk.f32.mxu1 %vm505_vm2, %v488_v14 }
 0x103   : > { %1177 = vmatmul.mubr.msk.f32.gmra.mxu1 %vm505_vm2, %v489_v15 }
 0x1a7   : > { %v1157_v17 = vpop.f32.mrf.mxu1 }
 0x1a8   : > { %v626_v18 = vadd.f32 %v1157_v17, %v1017_v16 }
 0x1a9   : > { %v620_v19 = vpop.f32.mrf.mxu1 }
 0x1aa   : > { %701 = vst.msk [vmem:[%s1524_s8 + $0x8] sm:$0xff] %vm699_vm3, %v626_v18  ;;  %v621_v20 = vadd.f32 %v1017_v16, %v620_v19 }
 0x1ab   : > { %v1160_v21 = vpop.f32.mrf.mxu1 }
 0x1ac   : > { %700 = vst.msk [vmem:[%s1524_s8] sm:$0xff] %vm699_vm3, %v621_v20  ;;  %v636_v22 = vadd.f32 %v1160_v21, %v1017_v16 }
 0x1ad   : > { %v630_v23 = vpop.f32.mrf.mxu1 }
 0x1ae   : > { %703 = vst.msk [vmem:[%s1524_s8 + $0x18] sm:$0xff] %vm699_vm3, %v636_v22  ;;  %v631_v24 = vadd.f32 %v1017_v16, %v630_v23 }
 0x1af   : > { %v1163_v25 = vpop.f32.mrf.mxu1 }
 0x1b0   : > { %702 = vst.msk [vmem:[%s1524_s8 + $0x10] sm:$0xff] %vm699_vm3, %v631_v24  ;;  %v646_v26 = vadd.f32 %v1163_v25, %v1017_v16 }
 0x1b1   : > { %v640_v27 = vpop.f32.mrf.mxu1 }
 0x1b2   : > { %705 = vst.msk [vmem:[%s1524_s8 + $0x28] sm:$0xff] %vm699_vm3, %v646_v26  ;;  %v641_v28 = vadd.f32 %v1017_v16, %v640_v27 }
 0x1b3   : > { %v1166_v29 = vpop.f32.mrf.mxu1 }
 0x1b4   : > { %704 = vst.msk [vmem:[%s1524_s8 + $0x20] sm:$0xff] %vm699_vm3, %v641_v28  ;;  %v656_v30 = vadd.f32 %v1166_v29, %v1017_v16 }
 0x1b5   : > { %v650_v31 = vpop.f32.mrf.mxu1 }
 0x1b6   : > { %707 = vst.msk [vmem:[%s1524_s8 + $0x38] sm:$0xff] %vm699_vm3, %v656_v30  ;;  %v651_v32 = vadd.f32 %v1017_v16, %v650_v31 }
 0x1b7   : > { %v1169_v33 = vpop.f32.mrf.mxu1 }
 0x1b8   : > { %706 = vst.msk [vmem:[%s1524_s8 + $0x30] sm:$0xff] %vm699_vm3, %v651_v32  ;;  %v666_v34 = vadd.f32 %v1169_v33, %v1017_v16 }
 0x1b9   : > { %v660_v35 = vpop.f32.mrf.mxu1 }
 0x1ba   : > { %709 = vst.msk [vmem:[%s1524_s8 + $0x48] sm:$0xff] %vm699_vm3, %v666_v34  ;;  %v661_v36 = vadd.f32 %v1017_v16, %v660_v35 }
 0x1bb   : > { %v1172_v37 = vpop.f32.mrf.mxu1 }
 0x1bc   : > { %708 = vst.msk [vmem:[%s1524_s8 + $0x40] sm:$0xff] %vm699_vm3, %v661_v36  ;;  %v676_v38 = vadd.f32 %v1172_v37, %v1017_v16 }
 0x1bd   : > { %v670_v39 = vpop.f32.mrf.mxu1 }
 0x1be   : > { %711 = vst.msk [vmem:[%s1524_s8 + $0x58] sm:$0xff] %vm699_vm3, %v676_v38  ;;  %v671_v40 = vadd.f32 %v1017_v16, %v670_v39 }
 0x1bf   : > { %v1175_v41 = vpop.f32.mrf.mxu1 }
 0x1c0   : > { %710 = vst.msk [vmem:[%s1524_s8 + $0x50] sm:$0xff] %vm699_vm3, %v671_v40  ;;  %v686_v42 = vadd.f32 %v1175_v41, %v1017_v16 }
 0x1c1   : > { %v680_v43 = vpop.f32.mrf.mxu1 }
 0x1c2   : > { %713 = vst.msk [vmem:[%s1524_s8 + $0x68] sm:$0xff] %vm699_vm3, %v686_v42  ;;  %v681_v44 = vadd.f32 %v1017_v16, %v680_v43 }
 0x1c3   : > { %v1178_v45 = vpop.f32.mrf.mxu1 }
 0x1c4   : > { %712 = vst.msk [vmem:[%s1524_s8 + $0x60] sm:$0xff] %vm699_vm3, %v681_v44  ;;  %v696_v46 = vadd.f32 %v1178_v45, %v1017_v16  ;;  %722 = sbr.rel (!%p1410_p4) target bundleno = 498 (0x1f2), region = 44 }
 0x1c5   : > { %v690_v47 = vpop.f32.mrf.mxu1 }
 0x1c6   : > { %715 = vst.msk [vmem:[%s1524_s8 + $0x78] sm:$0xff] %vm699_vm3, %v696_v46  ;;  %v691_v48 = vadd.f32 %v1017_v16, %v690_v47 }
 0x1c8   : > { %714 = vst.msk [vmem:[%s1524_s8 + $0x70] sm:$0xff] %vm699_vm3, %v691_v48 }
 0x1c9   : > { %s1672_s18 = smov (!%p725_p8, %s724_s18), 16 }
 0x1ca   : > { %s1036_s13 = sshll.u32 %s1672_s18, 7 }
 0x1cb   : > { %p1039_p9 = scmp.eq.s32.totalorder %s1036_s13, 0 }
 0x1cc   : > { %s1571_s14 = sshrl.u32 (!%p1039_p9), %s1672_s18, 4 }
 0x1cd   : > { %733 = sbr.rel (%p1039_p9) target bundleno = 498 (0x1f2), region = 48  ;;  %p1040_p10 = scmp.le.s32.totalorder (!%p1039_p9), %s1571_s14, 0 }
 0x1d2   : > { %948 = sbr.rel (%p1040_p10) target bundleno = 481 (0x1e1), region = 124  ;;  %s1665_s21 = smov (!%p1040_p10), %s1565_s12 }
 0x1d3   : > { %s1666_s26 = smov (!%p1040_p10), %s1524_s8  ;;  %s1580_s6 = smov (!%p1040_p10), 0  }
 0x1d4   : > { %s1582_s15 = smov (!%p1040_p10), 0  }
 0x1d7 LB: >> { %v826_v49 = vld [vmem:[%s1329_s26] sm:$0xff]  ;;  %v828_v50 = vld [vmem:[%s1329_s26 + $0x8] sm:$0xff]  ;;  %v830_v51 = vld [vmem:[%s1329_s26 + $0x10] sm:$0xff]  ;;  %s858_s16 = sadd.s32 1, %s1333_s6  ;;  %s820_s15 = sadd.s32 1, %s1337_s15   ;;  %s1337_s15 = sphi %s1582_s15, %s820_s15   ;;  %s1333_s6 = sphi %s1580_s6, %s1667_s6   ;;  %s1329_s26 = sphi %s1666_s26, %s863_s26   ;;  %s1325_s21 = sphi %s1665_s21, %s864_s21  }
 0x1d8   : >> { %827 = vst [vmem:[%s1325_s21] sm:$0xff] %v826_v49  ;;  %829 = vst [vmem:[%s1325_s21 + $0x8] sm:$0xff] %v828_v50  ;;  %v832_v52 = vld [vmem:[%s1329_s26 + $0x18] sm:$0xff]  ;;  %v834_v53 = vld [vmem:[%s1329_s26 + $0x20] sm:$0xff]  ;;  %p859_p11 = scmp.ge.s32.totalorder %s858_s16, %s1571_s14  ;;  %p819_p12 = scmp.ge.s32.totalorder %s820_s15, %s1571_s14 }
 0x1d9   : >> { %831 = vst [vmem:[%s1325_s21 + $0x10] sm:$0xff] %v830_v51  ;;  %v836_v54 = vld [vmem:[%s1329_s26 + $0x28] sm:$0xff]  ;;  %833 = vst [vmem:[%s1325_s21 + $0x18] sm:$0xff] %v832_v52  ;;  %v838_v55 = vld [vmem:[%s1329_s26 + $0x30] sm:$0xff] }
 0x1da   : >> { %835 = vst [vmem:[%s1325_s21 + $0x20] sm:$0xff] %v834_v53  ;;  %837 = vst [vmem:[%s1325_s21 + $0x28] sm:$0xff] %v836_v54  ;;  %v840_v56 = vld [vmem:[%s1329_s26 + $0x38] sm:$0xff]  ;;  %v842_v57 = vld [vmem:[%s1329_s26 + $0x40] sm:$0xff]  ;;  %s1674_s16 = smov (%p859_p11, %s858_s16), 0 }
 0x1db   : >> { %839 = vst [vmem:[%s1325_s21 + $0x30] sm:$0xff] %v838_v55  ;;  %841 = vst [vmem:[%s1325_s21 + $0x38] sm:$0xff] %v840_v56  ;;  %v844_v58 = vld [vmem:[%s1329_s26 + $0x48] sm:$0xff]  ;;  %v846_v59 = vld [vmem:[%s1329_s26 + $0x50] sm:$0xff]  ;;  %s1041_s17 = sshll.u32 %s1674_s16, 7  ;;  %s1667_s6 = smov %s1674_s16 }
 0x1dc   : >> { %843 = vst [vmem:[%s1325_s21 + $0x40] sm:$0xff] %v842_v57  ;;  %v848_v60 = vld [vmem:[%s1329_s26 + $0x58] sm:$0xff]  ;;  %845 = vst [vmem:[%s1325_s21 + $0x48] sm:$0xff] %v844_v58  ;;  %v850_v61 = vld [vmem:[%s1329_s26 + $0x60] sm:$0xff]  ;;  %822 = sbr.rel (!%p819_p12) target bundleno = 471 (0x1d7), region = 130 }
 0x1dd   : >> { %847 = vst [vmem:[%s1325_s21 + $0x50] sm:$0xff] %v846_v59  ;;  %849 = vst [vmem:[%s1325_s21 + $0x58] sm:$0xff] %v848_v60  ;;  %v852_v62 = vld [vmem:[%s1329_s26 + $0x68] sm:$0xff]  ;;  %v854_v63 = vld [vmem:[%s1329_s26 + $0x70] sm:$0xff] }
 0x1de   : >> { %851 = vst [vmem:[%s1325_s21 + $0x60] sm:$0xff] %v850_v61  ;;  %853 = vst [vmem:[%s1325_s21 + $0x68] sm:$0xff] %v852_v62  ;;  %v856_v0 = vld [vmem:[%s1329_s26 + $0x78] sm:$0xff]  ;;  %s863_s26 = scalar_lea.vmem %s1524_s8, %s1041_s17 [#allocation2]  }
 0x1df   : >> { %855 = vst [vmem:[%s1325_s21 + $0x70] sm:$0xff] %v854_v63  ;;  %857 = vst [vmem:[%s1325_s21 + $0x78] sm:$0xff] %v856_v0  ;;  %s864_s21 = scalar_lea.vmem %s1565_s12, %s1041_s17  }
 0x1e1 PF: > { %s1640_s20 = sand.u32 15, %s1672_s18   ;;  %s1052_s23 = sshll.u32 %s1571_s14, 7 }
 0x1e2   : > { %s869_s24 = scalar_lea.vmem %s1524_s8, %s1052_s23 [#allocation2]   ;;  %s871_s27 = scalar_lea.vmem %s1565_s12, %s1052_s23  }
 0x1e3   : > { %p1046_p13 = scmp.le.s32.totalorder %s1640_s20, 0 }
 0x1e4   : > { %s1339_s28 = smov (!%p1046_p13), %s871_s27   ;;  %s1343_s29 = smov (!%p1046_p13), %s869_s24  }
 0x1e5   : > { %962 = sbr.rel (%p1046_p13) target bundleno = 498 (0x1f2), region = 135  ;;  %s1347_s30 = smov (!%p1046_p13), 0  }
 0x1e6   : > { %s1351_s7 = smov (!%p1046_p13), 0  }
 0x1ea LB: >> { %v881_v1 = vld [vmem:[%s1345_s29] sm:$0xff]  ;;  %s883_s18 = sadd.s32 1, %s1349_s30  ;;  %s875_s7 = sadd.s32 1, %s1353_s7   ;;  %s1353_s7 = sphi %s1351_s7, %s875_s7   ;;  %s1349_s30 = sphi %s1347_s30, %s1348_s30   ;;  %s1345_s29 = sphi %s1343_s29, %s888_s29   ;;  %s1341_s28 = sphi %s1339_s28, %s889_s28  }
 0x1eb   : >> { %882 = vst [vmem:[%s1341_s28] sm:$0xff] %v881_v1  ;;  %p884_p0 = scmp.ge.s32.totalorder %s883_s18, %s1640_s20  ;;  %p874_p1 = scmp.ge.s32.totalorder %s875_s7, %s1640_s20 }
 0x1ed   : >> { %s1676_s18 = smov (%p884_p0, %s883_s18), 0  ;;  %877 = sbr.rel (!%p874_p1) target bundleno = 490 (0x1ea), region = 141 }
 0x1ee   : >> { %s1047_s8 = sshll.u32 %s1676_s18, 3  ;;  %s1348_s30 = smov %s1676_s18  }
 0x1ef   : >> { %s888_s29 = scalar_lea.vmem %s869_s24, %s1047_s8 [#allocation2]   ;;  %s889_s28 = scalar_lea.vmem %s871_s27, %s1047_s8  }
 0x1f2 PF: > { %p12_p2 = scmp.ge.s32.totalorder %s1400_s22, 5   ;;  %s1668_s18 = smov %s1317_s19 }
 0x1f3   : > { %s1669_s19 = smov %s1408_s25  ;;  %s1670_s20 = smov %s1400_s22 }
 0x1f4   :  { %14 = sbr.rel (!%p12_p2) target bundleno = 2 (0x2), region = 152 }

</bundles_post_ra>
